<compile_context>
chip_gen: v5e
topology: v5e:2x2
jax: 0.10.0
libtpu: 0.0.40
codegen_flags: <defaults>
</compile_context>

<pallas_src>
import jax
import jax.numpy as jnp
import numpy as np
from jax.experimental import pallas as pl
from jax.experimental.pallas import tpu as pltpu

C_IN = 32
C_OUT = 32
KH = KW = 2
STRIDE = 2
PAD = 1
DIL = 2
MIN_V = 0.1
MAX_V = 0.8
K = C_IN * KH * KW          # 128 -- exactly one MXU contraction width
TM_MAX = 2048               # lane-tile size for the flattened (N*Ho*Wo) dim
LANE = 128


def _round_up(v, mult):
    return ((v + mult - 1) // mult) * mult


def _conv_mm_clamp_kernel(w_ref, b_ref, p_ref, o_ref):
    # w_ref: (C_OUT, K)   b_ref: (C_OUT, 1)   p_ref: (K, TM)   o_ref: (C_OUT, TM)
    acc = jnp.dot(w_ref[...], p_ref[...], preferred_element_type=jnp.float32)
    o_ref[...] = jnp.clip(acc + b_ref[...], MIN_V, MAX_V)


def _build_patches(x, h_out, w_out):
    """x: (N, C_IN, H, W) -> (C_IN*KH*KW, N*Ho*Wo), K ordered as (ci, kh, kw).

    x is transposed to channel-major once (major-dim swap only: contiguous HxW
    planes move as blocks); taps are stacked on a new axis right after C, so the
    final reshape merges only adjacent dims (free, no further transpose).
    """
    n = x.shape[0]
    xt = jnp.transpose(x, (1, 0, 2, 3))                      # (C_IN, N, H, W)
    xp = jnp.pad(xt, ((0, 0), (0, 0), (PAD, PAD), (PAD, PAD)))
    taps = []
    for kh in range(KH):
        for kw in range(KW):
            hs = kh * DIL
            ws = kw * DIL
            taps.append(
                xp[:, :, hs:hs + STRIDE * h_out:STRIDE,
                         ws:ws + STRIDE * w_out:STRIDE]
            )                                                # (C_IN, N, Ho, Wo)
    pat = jnp.stack(taps, axis=1)                            # (C_IN, KH*KW, N, Ho, Wo)
    return pat.reshape(K, n * h_out * w_out)                 # adjacent-dim merge: free


def model_forward(x, weight, bias):
    """x: (N, C_IN, H, W) f32; weight: (C_OUT, C_IN, KH, KW); bias: (C_OUT,)."""
    n, _, h, w = x.shape
    h_out = (h + 2 * PAD - DIL * (KH - 1) - 1) // STRIDE + 1
    w_out = (w + 2 * PAD - DIL * (KW - 1) - 1) // STRIDE + 1
    m = h_out * w_out
    nm = n * m

    pat = _build_patches(x, h_out, w_out)                    # (K, N*Ho*Wo)

    # Lane-dense tiling: tile is a multiple of 128 and the padded extent is a
    # multiple of the tile, so every block (load and store) is full-width.
    tm = min(TM_MAX, _round_up(nm, LANE))
    m_pad = _round_up(nm, tm)
    if m_pad != nm:
        pat = jnp.pad(pat, ((0, 0), (0, m_pad - nm)))
    grid = (m_pad // tm,)

    w2 = weight.reshape(C_OUT, K).astype(jnp.float32)        # (32, 128)
    b2 = bias.reshape(C_OUT, 1).astype(jnp.float32)          # (32, 1)

    out_flat = pl.pallas_call(
        _conv_mm_clamp_kernel,
        out_shape=jax.ShapeDtypeStruct((C_OUT, m_pad), jnp.float32),
        grid=grid,
        in_specs=[
            pl.BlockSpec((C_OUT, K), lambda j: (0, 0)),      # weights, resident
            pl.BlockSpec((C_OUT, 1), lambda j: (0, 0)),      # bias, resident
            pl.BlockSpec((K, tm), lambda j: (0, j)),         # patch tile
        ],
        out_specs=pl.BlockSpec((C_OUT, tm), lambda j: (0, j)),
        compiler_params=pltpu.CompilerParams(
            dimension_semantics=("parallel",)),
    )(w2, b2, pat)

    # Drop padded columns (they hold clip(bias, MIN_V, MAX_V)), then reshape
    # (adjacent-dim split) and restore NCHW with one small output transpose.
    out = out_flat[:, :nm].reshape(C_OUT, n, h_out, w_out)
    return jnp.transpose(out, (1, 0, 2, 3))


def reference_forward(x, weight, bias):
    y = jax.lax.conv_general_dilated(
        x, weight,
        window_strides=(STRIDE, STRIDE),
        padding=((PAD, PAD), (PAD, PAD)),
        rhs_dilation=(DIL, DIL),
        dimension_numbers=("NCHW", "OIHW", "NCHW"),
    )
    y = y + bias.reshape(1, C_OUT, 1, 1)
    return jnp.minimum(jnp.maximum(y, MIN_V), MAX_V)


if __name__ == "__main__":
    key = jax.random.PRNGKey(0)
    k_x, k_w, k_b, k_x2 = jax.random.split(key, 4)

    # small shapes consistent with the module (channels fixed at 32 by the conv)
    N, H, W = 2, 16, 16
    x = jax.random.normal(k_x, (N, C_IN, H, W), dtype=jnp.float32)

    # deterministic synthetic parameter init (not a checkpoint load)
    fan_in = C_IN * KH * KW
    bound = 1.0 / np.sqrt(fan_in)
    weight = jax.random.uniform(k_w, (C_OUT, C_IN, KH, KW), jnp.float32, -bound, bound)
    bias = jax.random.uniform(k_b, (C_OUT,), jnp.float32, -bound, bound)

    out = jax.block_until_ready(model_forward(x, weight, bias))
    ref = jax.block_until_ready(reference_forward(x, weight, bias))
    np.testing.assert_allclose(np.asarray(out), np.asarray(ref), rtol=1e-5, atol=1e-5)

    # extra check: odd spatial size exercises the lane-padding / slice-off path
    x2 = jax.random.normal(k_x2, (1, C_IN, 10, 10), dtype=jnp.float32)
    out2 = jax.block_until_ready(model_forward(x2, weight, bias))
    ref2 = jax.block_until_ready(reference_forward(x2, weight, bias))
    np.testing.assert_allclose(np.asarray(out2), np.asarray(ref2), rtol=1e-5, atol=1e-5)

    print("KERNEL_OK")
</pallas_src>

<mosaic_0001>
module attributes {stable_mosaic.version = 11 : i64} {
  func.func @_conv_mm_clamp_kernel(%arg0: i32, %arg1: memref<32x128xf32, #tpu.memory_space<vmem>>, %arg2: memref<32x1xf32, #tpu.memory_space<vmem>>, %arg3: memref<128x128xf32, #tpu.memory_space<vmem>>, %arg4: memref<32x128xf32, #tpu.memory_space<vmem>>) attributes {dimension_semantics = [#tpu.dimension_semantics<parallel>], iteration_bounds = array<i64: 1>, scalar_prefetch = 0 : i64, scratch_operands = 0 : i64, tpu.core_type = #tpu.core_type<tc>, window_params = [{pipeline_mode = #tpu.pipeline_mode<synchronous>, transform_indices = @transform_0, window_bounds = array<i64: 32, 128>}, {pipeline_mode = #tpu.pipeline_mode<synchronous>, transform_indices = @transform_1, window_bounds = array<i64: 32, 1>}, {transform_indices = @transform_2, window_bounds = array<i64: 128, 128>}, {transform_indices = @transform_3, window_bounds = array<i64: 32, 128>}]} {
    %c0 = arith.constant 0 : index
    %c0_0 = arith.constant 0 : index
    %0 = vector.load %arg1[%c0, %c0_0] : memref<32x128xf32, #tpu.memory_space<vmem>>, vector<32x128xf32>
    %c0_1 = arith.constant 0 : index
    %c0_2 = arith.constant 0 : index
    %1 = vector.load %arg3[%c0_1, %c0_2] : memref<128x128xf32, #tpu.memory_space<vmem>>, vector<128x128xf32>
    %cst = arith.constant dense<0.000000e+00> : vector<32x128xf32>
    %2 = tpu.matmul %0, %1, %cst {dimension_numbers = #tpu.dot_dimension_numbers<[1], [0], [0], [1], [0, 0, 1, 1], [], []>} : vector<32x128xf32>, vector<128x128xf32>, vector<32x128xf32> -> vector<32x128xf32>
    %c0_3 = arith.constant 0 : index
    %c0_4 = arith.constant 0 : index
    %3 = vector.load %arg2[%c0_3, %c0_4] : memref<32x1xf32, #tpu.memory_space<vmem>>, vector<32x1xf32>
    %4 = vector.broadcast %3 : vector<32x1xf32> to vector<32x128xf32>
    %5 = arith.addf %2, %4 : vector<32x128xf32>
    %cst_5 = arith.constant 1.000000e-01 : f32
    %cst_6 = arith.constant 8.000000e-01 : f32
    %6 = vector.broadcast %cst_5 : f32 to vector<32x128xf32>
    %7 = arith.maximumf %6, %5 : vector<32x128xf32>
    %8 = vector.broadcast %cst_6 : f32 to vector<32x128xf32>
    %9 = arith.minimumf %8, %7 : vector<32x128xf32>
    %c0_7 = arith.constant 0 : index
    %c0_8 = arith.constant 0 : index
    %10 = vector.load %arg4[%c0_7, %c0_8] : memref<32x128xf32, #tpu.memory_space<vmem>>, vector<32x128xf32>
    tpu.vector_store %arg4[%c0_7, %c0_8], %9 {strides = array<i32>} : memref<32x128xf32, #tpu.memory_space<vmem>>, vector<32x128xf32>,
    return
  }
  func.func @transform_0(%arg0: i32) -> (i32, i32) {
    %c0_i32 = arith.constant 0 : i32
    %c0_i32_0 = arith.constant 0 : i32
    %c0_i32_1 = arith.constant 0 : i32
    return %c0_i32, %c0_i32_0 : i32, i32
  }
  func.func @transform_1(%arg0: i32) -> (i32, i32) {
    %c0_i32 = arith.constant 0 : i32
    %c0_i32_0 = arith.constant 0 : i32
    %c0_i32_1 = arith.constant 0 : i32
    return %c0_i32, %c0_i32_0 : i32, i32
  }
  func.func @transform_2(%arg0: i32) -> (i32, i32) {
    %c0_i32 = arith.constant 0 : i32
    %c0_i32_0 = arith.constant 0 : i32
    return %c0_i32, %arg0 : i32, i32
  }
  func.func @transform_3(%arg0: i32) -> (i32, i32) {
    %c0_i32 = arith.constant 0 : i32
    %c0_i32_0 = arith.constant 0 : i32
    return %c0_i32, %arg0 : i32, i32
  }
}

</mosaic_0001>

<bundles_post_ra>
// kernel: tpu_custom_call.1
= control target key start
LH: loop header
LB: loop body
LE: loop exit
PB: predicated region body
PF: predicated region fallthrough
CT: control target
= control target key end

     0   :  { %8 = vsyncpa [#allocation3], 0  ;;  %s303_s0 = inlined_call_operand.vmem [shape: f32[32,128], index: 0, kind: input, shape index: {}]   ;;  %s304_s1 = inlined_call_operand.vmem [shape: f32[32,1], index: 1, kind: input, shape index: {}]   ;;  %s305_s2 = inlined_call_operand.hbm [shape: f32[128,128], index: 2, kind: input, shape index: {}]   ;;  %s306_s3 = inlined_call_operand.hbm [shape: f32[32,128], index: 3, kind: output, shape index: {}]  }
   0x1   :  { %9 = vsyncpa [#allocation4], 0  ;;  %s18_s14 = sshll.u32 %s305_s2, 4  ;;  %s242_s15 = smov [#allocation2]   ;;  %s19_s14 = int_to_ptr.hbm [resolvable:$true] %s18_s14 }
   0x2   :  { %s20_s16 = sshll.u32 %s242_s15, 4  ;;  %s243_s17 = smov 128   ;;  %s21_s16 = int_to_ptr.vmem [resolvable:$true] %s20_s16 }
   0x3   :  { %s244_s18 = smov 8  }
   0x4   :  { %26 = dma.hbm_to_vmem [thread:$0]  %s19_s14, 2048, %s21_s16, [#allocation3], %s243_s17, %s243_s17, %s244_s18  }
   0x5   :  { %238 = dma.done.wait [#allocation3], 2048  }
   0x6   :  { %239 = vsyncadd [#allocation3], 4294965248  ;;  %v50_v0 = vld [vmem:[#allocation2 + $0x78] sm:$0xff]  ;;  %v49_v1 = vld [vmem:[#allocation2 + $0x70] sm:$0xff]  ;;  %v245_v20 = vmov 0   ;;  %s122_s9 = sshll.u32 %s306_s3, 4  ;;  %s123_s9 = int_to_ptr.hbm [resolvable:$true] %s122_s9 }
   0x7   :  { %75 = vmatpush.msra.mxu0 %v50_v0  ;;  %135 = vmatpush.msra.mxu1 %v50_v0  ;;  %v48_v2 = vld [vmem:[#allocation2 + $0x68] sm:$0xff]  ;;  %v47_v3 = vld [vmem:[#allocation2 + $0x60] sm:$0xff]  ;;  %v46_v4 = vld [vmem:[#allocation2 + $0x58] sm:$0xff] }
   0x8   :  { %136 = vmatpush.msra.mxu2 %v50_v0  ;;  %137 = vmatpush.msra.mxu3 %v50_v0  ;;  %v45_v5 = vld [vmem:[#allocation2 + $0x50] sm:$0xff]  ;;  %v44_v6 = vld [vmem:[#allocation2 + $0x48] sm:$0xff]  ;;  %v43_v7 = vld [vmem:[#allocation2 + $0x40] sm:$0xff] }
   0x9   :  { %76 = vmatpush.msra.mxu0 %v49_v1  ;;  %138 = vmatpush.msra.mxu1 %v49_v1  ;;  %v42_v8 = vld [vmem:[#allocation2 + $0x38] sm:$0xff]  ;;  %v41_v9 = vld [vmem:[#allocation2 + $0x30] sm:$0xff]  ;;  %v40_v10 = vld [vmem:[#allocation2 + $0x28] sm:$0xff] }
   0xa   :  { %139 = vmatpush.msra.mxu2 %v49_v1  ;;  %140 = vmatpush.msra.mxu3 %v49_v1  ;;  %v39_v11 = vld [vmem:[#allocation2 + $0x20] sm:$0xff]  ;;  %v38_v12 = vld [vmem:[#allocation2 + $0x18] sm:$0xff]  ;;  %v37_v13 = vld [vmem:[#allocation2 + $0x10] sm:$0xff] }
   0xb   :  { %77 = vmatpush.msra.mxu0 %v48_v2  ;;  %141 = vmatpush.msra.mxu1 %v48_v2  ;;  %v36_v14 = vld [vmem:[#allocation2 + $0x8] sm:$0xff]  ;;  %v35_v15 = vld [vmem:[#allocation2] sm:$0xff]  ;;  %v33_v18 = vld [vmem:[%s303_s0 + $0x10] sm:$0xff] }
   0xc   :  { %142 = vmatpush.msra.mxu2 %v48_v2  ;;  %143 = vmatpush.msra.mxu3 %v48_v2  ;;  %v31_v16 = vld [vmem:[%s303_s0] sm:$0xff]  ;;  %v32_v17 = vld [vmem:[%s303_s0 + $0x8] sm:$0xff]  ;;  %v34_v19 = vld [vmem:[%s303_s0 + $0x18] sm:$0xff] }
   0xd   :  { %78 = vmatpush.msra.mxu0 %v47_v3  ;;  %144 = vmatpush.msra.mxu1 %v47_v3  ;;  %v53_v21 = vld [vmem:[%s304_s1 + $0x10] sm:$0xff]  ;;  %v51_v22 = vld [vmem:[%s304_s1] sm:$0xff]  ;;  %v54_v23 = vld [vmem:[%s304_s1 + $0x18] sm:$0xff] }
   0xe   :  { %145 = vmatpush.msra.mxu2 %v47_v3  ;;  %146 = vmatpush.msra.mxu3 %v47_v3  ;;  %v52_v24 = vld [vmem:[%s304_s1 + $0x8] sm:$0xff]  ;;  %s246_s1 = smov [#allocation5]  }
   0xf   :  { %79 = vmatpush.msra.mxu0 %v46_v4  ;;  %147 = vmatpush.msra.mxu1 %v46_v4  ;;  %s120_s6 = sshll.u32 %s246_s1, 4  ;;  %s121_s6 = int_to_ptr.vmem [resolvable:$true] %s120_s6 }
  0x10   :  { %148 = vmatpush.msra.mxu2 %v46_v4  ;;  %149 = vmatpush.msra.mxu3 %v46_v4 }
  0x11   :  { %80 = vmatpush.msra.mxu0 %v45_v5  ;;  %150 = vmatpush.msra.mxu1 %v45_v5 }
  0x12   :  { %151 = vmatpush.msra.mxu2 %v45_v5  ;;  %152 = vmatpush.msra.mxu3 %v45_v5 }
  0x13   :  { %81 = vmatpush.msra.mxu0 %v44_v6  ;;  %153 = vmatpush.msra.mxu1 %v44_v6 }
  0x14   :  { %154 = vmatpush.msra.mxu2 %v44_v6  ;;  %155 = vmatpush.msra.mxu3 %v44_v6 }
  0x15   :  { %82 = vmatpush.msra.mxu0 %v43_v7  ;;  %156 = vmatpush.msra.mxu1 %v43_v7 }
  0x16   :  { %157 = vmatpush.msra.mxu2 %v43_v7  ;;  %158 = vmatpush.msra.mxu3 %v43_v7 }
  0x17   :  { %83 = vmatpush.msra.mxu0 %v42_v8  ;;  %159 = vmatpush.msra.mxu1 %v42_v8 }
  0x18   :  { %160 = vmatpush.msra.mxu2 %v42_v8  ;;  %161 = vmatpush.msra.mxu3 %v42_v8 }
  0x19   :  { %84 = vmatpush.msra.mxu0 %v41_v9  ;;  %162 = vmatpush.msra.mxu1 %v41_v9 }
  0x1a   :  { %163 = vmatpush.msra.mxu2 %v41_v9  ;;  %164 = vmatpush.msra.mxu3 %v41_v9 }
  0x1b   :  { %85 = vmatpush.msra.mxu0 %v40_v10  ;;  %165 = vmatpush.msra.mxu1 %v40_v10 }
  0x1c   :  { %166 = vmatpush.msra.mxu2 %v40_v10  ;;  %167 = vmatpush.msra.mxu3 %v40_v10 }
  0x1d   :  { %86 = vmatpush.msra.mxu0 %v39_v11  ;;  %168 = vmatpush.msra.mxu1 %v39_v11 }
  0x1e   :  { %169 = vmatpush.msra.mxu2 %v39_v11  ;;  %170 = vmatpush.msra.mxu3 %v39_v11 }
  0x1f   :  { %87 = vmatpush.msra.mxu0 %v38_v12  ;;  %171 = vmatpush.msra.mxu1 %v38_v12 }
  0x20   :  { %172 = vmatpush.msra.mxu2 %v38_v12  ;;  %173 = vmatpush.msra.mxu3 %v38_v12 }
  0x21   :  { %88 = vmatpush.msra.mxu0 %v37_v13  ;;  %174 = vmatpush.msra.mxu1 %v37_v13 }
  0x22   :  { %175 = vmatpush.msra.mxu2 %v37_v13  ;;  %176 = vmatpush.msra.mxu3 %v37_v13 }
  0x23   :  { %89 = vmatpush.msra.mxu0 %v36_v14  ;;  %177 = vmatpush.msra.mxu1 %v36_v14 }
  0x24   :  { %178 = vmatpush.msra.mxu2 %v36_v14  ;;  %179 = vmatpush.msra.mxu3 %v36_v14 }
  0x25   :  { %90 = vmatpush.msra.mxu0 %v35_v15  ;;  %180 = vmatpush.msra.mxu1 %v35_v15 }
  0x26   :  { %181 = vmatpush.msra.mxu2 %v35_v15  ;;  %182 = vmatpush.msra.mxu3 %v35_v15 }
  0x27   :  { %189 = vset.pattern.permute.xlu1 %v245_v20  ;;  %188 = vset.pattern.permute.xlu0 %v245_v20 }
  0x28   :  { %91 = vmatmul.f32.vlgmr.msra.gmra.mxu0 %v31_v16  ;;  %94 = vmatmul.f32.vlgmr.msra.gmra.mxu1 %v32_v17 }
  0x29   :  { %97 = vmatmul.f32.vlgmr.msra.gmra.mxu2 %v33_v18  ;;  %100 = vmatmul.f32.vlgmr.msra.gmra.mxu3 %v34_v19 }
  0x2a   :  { %67 = vperm.xlu1 %189, %v53_v21   ;;  %57 = vperm.xlu0 %188, %v51_v22  }
  0x32   :  { %72 = vperm.xlu1 %189, %v54_v23   ;;  %62 = vperm.xlu0 %188, %v52_v24  }
  0x9c   :  { %v58_v25 = vpop.permute.xlu0 %57  ;;  %v68_v26 = vpop.permute.xlu1 %67 }
  0xa4   :  { %v63_v27 = vpop.permute.xlu0 %62  ;;  %v73_v36 = vpop.permute.xlu1 %72 }
  0xa5   :  { %v92_v28 = vpop.f32.mrf.mxu0  ;;  %v95_v29 = vpop.f32.mrf.mxu1 }
  0xa6   :  { %v93_v30 = vadd.f32 %v92_v28, %v58_v25  ;;  %v96_v31 = vadd.f32 %v95_v29, %v63_v27 }
  0xa8   :  { %v104_v32 = vmax.f32 %v93_v30, 0.1  ;;  %v105_v33 = vmax.f32 %v96_v31, 0.1 }
  0xaa   :  { %v108_v34 = vmin.f32 %v104_v32, 0.8  ;;  %v109_v35 = vmin.f32 %v105_v33, 0.8 }
  0xac   :  { %112 = vst [vmem:[#allocation5] sm:$0xff] %v108_v34  ;;  %v98_v37 = vpop.f32.mrf.mxu2  ;;  %v101_v38 = vpop.f32.mrf.mxu3 }
  0xad   :  { %113 = vst [vmem:[#allocation5 + $0x8] sm:$0xff] %v109_v35  ;;  %v99_v39 = vadd.f32 %v98_v37, %v68_v26  ;;  %v102_v40 = vadd.f32 %v101_v38, %v73_v36 }
  0xaf   :  { %v106_v41 = vmax.f32 %v99_v39, 0.1  ;;  %v107_v42 = vmax.f32 %v102_v40, 0.1 }
  0xb1   :  { %v110_v43 = vmin.f32 %v106_v41, 0.8  ;;  %v111_v44 = vmin.f32 %v107_v42, 0.8 }
  0xb3   :  { %114 = vst [vmem:[#allocation5 + $0x10] sm:$0xff] %v110_v43 }
  0xb4   :  { %115 = vst [vmem:[#allocation5 + $0x18] sm:$0xff] %v111_v44 }
  0xb5   :  { %128 = dma.vmem_to_hbm [thread:$0]  %s121_s6, 512, %s123_s9, [#allocation4], %s243_s17, %s243_s17, %s244_s18  }
  0xb6   :  { %240 = dma.done.wait [#allocation4], 512  }
  0xb7   :  { %241 = vsyncadd [#allocation4], 4294966784 }
  0xb8   :  { %133 = vsyncpa [#allocation3], 1 }
  0xb9   :  { %134 = vsyncpa [#allocation4], 1 }

</bundles_post_ra>
